<compile_context>
chip_gen: v7x
topology: tpu7x:2x2x1
jax: 0.10.0
libtpu: 0.0.40
codegen_flags: <defaults>
</compile_context>

<pallas_src>
import math

import jax
import jax.numpy as jnp
from jax.experimental import pallas as pl
from jax.experimental.pallas import tpu as pltpu


def _round_up(x, m):
    return (x + m - 1) // m * m


def _mlp_critic_kernel(x_ref, w1_ref, b1_ref, w2_ref, b2_ref, w3t_ref, b3_ref, o_ref):
    # x_ref: (TB, in_dim) batch-major tile straight from HBM.
    # Activations are feature-major (H, TB): batch lives on the lane axis.

    # Layer 1: relu(W1 @ x^T + b1); contract the shared in_dim axis directly so
    # no wrapper-side transpose of x is needed (any relayout happens on-chip).
    h1 = jax.lax.dot_general(
        w1_ref[...], x_ref[...], (((1,), (1,)), ((), ())),
        preferred_element_type=jnp.float32) + b1_ref[...]
    h1 = jnp.maximum(h1, 0.0)                                           # (H, TB)

    # Layer 2: relu(W2 @ h1 + b2) -- plain (H,H) x (H,TB) MXU matmul.
    h2 = jnp.dot(w2_ref[...], h1, preferred_element_type=jnp.float32) + b2_ref[...]
    h2 = jnp.maximum(h2, 0.0)                                           # (H, TB)

    # Layer 3: critic head.  out_dim == 1 -> skip the MXU (a 1-wide matmul
    # wastes a full push); VPU multiply + sublane (XLU) reduction instead.
    if o_ref.shape[0] == 1:
        out = jnp.sum(h2 * w3t_ref[...], axis=0, keepdims=True) + b3_ref[...]
    else:
        out = jax.lax.dot_general(
            w3t_ref[...], h2, (((0,), (0,)), ((), ())),
            preferred_element_type=jnp.float32) + b3_ref[...]
    o_ref[...] = out.astype(o_ref.dtype)                                # (out_dim, TB)


def _pick_tiling(B, in_dim):
    """Choose (TB, B_pad, num_tiles): 128-lane multiples, ~4MiB/tile budget,
    >=~4 tiles for pipelining / v7x megacore when B is big enough, last tile
    mostly real rows."""
    B_pad0 = _round_up(B, 128)
    # VMEM budget for one x tile (double-buffered by BlockSpec) -- comfortably
    # inside v5e's 16 MiB scoped default and v7x's 32 MiB default.
    tile_budget_bytes = 4 * 1024 * 1024
    tb_max = max(512, min(8192, (tile_budget_bytes // (in_dim * 4)) // 128 * 128))
    # Aim for >= 4 tiles when the batch allows it (pipelining + 2 TCs on v7x).
    target_tb = max(128, _round_up(pl.cdiv(B_pad0, 4), 128))
    tb = min(tb_max, target_tb)
    num_tiles = pl.cdiv(B_pad0, tb)
    # Re-balance TB so the last tile isn't mostly padding.
    tb = max(128, _round_up(pl.cdiv(B_pad0, num_tiles), 128))
    b_pad = num_tiles * tb
    return tb, b_pad, num_tiles


def mlp_critic_forward(x, params):
    """3-layer MLP critic forward pass with a single Pallas kernel.

    x: (B, in_dim) float32.
    params: PyTorch-layout (w1 (H,in), b1 (H,), w2 (H,H), b2 (H,), w3 (out,H), b3 (out,)).
    Returns (B, out_dim) float32, matching torch's net(x).
    """
    w1, b1, w2, b2, w3, b3 = params
    B, in_dim = x.shape
    H = w1.shape[0]
    out_dim = w3.shape[0]

    TB, B_pad, num_tiles = _pick_tiling(B, in_dim)

    # Only pad the batch dim if needed (no wrapper transpose of x anymore).
    x_in = jnp.pad(x, ((0, B_pad - B), (0, 0))) if B_pad != B else x

    # Cheap layout plumbing on tiny arrays: biases as columns, w3 transposed.
    b1c = b1.reshape(H, 1)
    b2c = b2.reshape(H, 1)
    w3t = jnp.transpose(w3)                             # (H, out_dim)
    b3c = b3.reshape(out_dim, 1)

    itemsize = 4  # float32
    flops = 2 * B_pad * (in_dim * H + H * H + H * out_dim)
    bytes_accessed = itemsize * (
        B_pad * in_dim                                   # x
        + H * in_dim + H + H * H + H + H * out_dim + out_dim  # params (once)
        + out_dim * B_pad)                               # output

    resident = lambda i: (0, 0)  # weights/biases: DMA once, stay VMEM-resident

    outT = pl.pallas_call(
        _mlp_critic_kernel,
        out_shape=jax.ShapeDtypeStruct((out_dim, B_pad), jnp.float32),
        grid=(num_tiles,),
        in_specs=[
            pl.BlockSpec((TB, in_dim), lambda i: (i, 0)),   # x tile, batch-major
            pl.BlockSpec((H, in_dim), resident),            # w1
            pl.BlockSpec((H, 1), resident),                 # b1
            pl.BlockSpec((H, H), resident),                 # w2
            pl.BlockSpec((H, 1), resident),                 # b2
            pl.BlockSpec((H, out_dim), resident),           # w3^T
            pl.BlockSpec((out_dim, 1), resident),           # b3
        ],
        out_specs=pl.BlockSpec((out_dim, TB), lambda i: (0, i)),  # lane-dense
        compiler_params=pltpu.CompilerParams(
            dimension_semantics=("parallel",)),
        cost_estimate=pl.CostEstimate(
            flops=flops, transcendentals=0, bytes_accessed=bytes_accessed),
    )(x_in, w1, b1c, w2, b2c, w3t, b3c)

    return jnp.transpose(outT[:, :B])                   # (B, out_dim)


def _xavier_uniform(key, out_features, in_features, gain):
    # torch.nn.init.xavier_uniform_: U(-a, a), a = gain * sqrt(6/(fan_in+fan_out))
    a = gain * math.sqrt(6.0 / (in_features + out_features))
    return jax.random.uniform(key, (out_features, in_features), dtype=jnp.float32,
                              minval=-a, maxval=a)


def init_params(key, in_dim, hidden_dim, out_dim):
    """Matches MLPNetworkCritic.init: xavier_uniform(gain=calculate_gain('relu')),
    bias filled with 0.01.  Weights in torch layout (out_features, in_features)."""
    gain = math.sqrt(2.0)  # nn.init.calculate_gain('relu')
    k1, k2, k3 = jax.random.split(key, 3)
    w1 = _xavier_uniform(k1, hidden_dim, in_dim, gain)
    b1 = jnp.full((hidden_dim,), 0.01, dtype=jnp.float32)
    w2 = _xavier_uniform(k2, hidden_dim, hidden_dim, gain)
    b2 = jnp.full((hidden_dim,), 0.01, dtype=jnp.float32)
    w3 = _xavier_uniform(k3, out_dim, hidden_dim, gain)
    b3 = jnp.full((out_dim,), 0.01, dtype=jnp.float32)
    return (w1, b1, w2, b2, w3, b3)


def reference_forward(x, params):
    """Pure-JAX reference (torch math: y = x @ W^T + b)."""
    w1, b1, w2, b2, w3, b3 = params
    hp = jax.lax.Precision.HIGHEST
    h1 = jnp.maximum(jnp.dot(x, w1.T, precision=hp) + b1, 0.0)
    h2 = jnp.maximum(jnp.dot(h1, w2.T, precision=hp) + b2, 0.0)
    return jnp.dot(h2, w3.T, precision=hp) + b3


if __name__ == "__main__":
    # Critic input: concatenated global state + joint actions (e.g. 3 agents x
    # (obs 12 + act 4)) -> in_dim=48; hidden_dim=64 (module default); out_dim=1.
    # TODO(synk): checkpoint save/load (file I/O) from the module is not a kernel concern.
    in_dim, hidden_dim, out_dim = 48, 64, 1
    key = jax.random.PRNGKey(0)
    k_params, k_x1, k_x2 = jax.random.split(key, 3)
    params = init_params(k_params, in_dim, hidden_dim, out_dim)

    # Small batch: single 128-lane padded tile.
    x_small = jax.random.normal(k_x1, (8, in_dim), dtype=jnp.float32)
    out_small = jax.block_until_ready(mlp_critic_forward(x_small, params))
    ref_small = reference_forward(x_small, params)
    assert out_small.shape == (8, out_dim), out_small.shape
    assert jnp.allclose(out_small, ref_small, atol=2e-3, rtol=2e-3), "small-batch mismatch"

    # Larger batch: exercises the batch grid (3 tiles of 128) + padding path.
    x_big = jax.random.normal(k_x2, (300, in_dim), dtype=jnp.float32)
    out_big = jax.block_until_ready(mlp_critic_forward(x_big, params))
    ref_big = reference_forward(x_big, params)
    assert out_big.shape == (300, out_dim), out_big.shape
    assert jnp.allclose(out_big, ref_big, atol=2e-3, rtol=2e-3), "big-batch mismatch"

    print("KERNEL_OK")
</pallas_src>

<mosaic_0001>
module attributes {stable_mosaic.version = 11 : i64} {
  func.func @_mlp_critic_kernel(%arg0: i32, %arg1: memref<128x48xf32, #tpu.memory_space<vmem>>, %arg2: memref<64x48xf32, #tpu.memory_space<vmem>>, %arg3: memref<64x1xf32, #tpu.memory_space<vmem>>, %arg4: memref<64x64xf32, #tpu.memory_space<vmem>>, %arg5: memref<64x1xf32, #tpu.memory_space<vmem>>, %arg6: memref<64x1xf32, #tpu.memory_space<vmem>>, %arg7: memref<1x1xf32, #tpu.memory_space<vmem>>, %arg8: memref<1x128xf32, #tpu.memory_space<vmem>>) attributes {dimension_semantics = [#tpu.dimension_semantics<parallel>], iteration_bounds = array<i64: 1>, scalar_prefetch = 0 : i64, scratch_operands = 0 : i64, tpu.core_type = #tpu.core_type<tc>, window_params = [{transform_indices = @transform_0, window_bounds = array<i64: 128, 48>}, {pipeline_mode = #tpu.pipeline_mode<synchronous>, transform_indices = @transform_1, window_bounds = array<i64: 64, 48>}, {pipeline_mode = #tpu.pipeline_mode<synchronous>, transform_indices = @transform_2, window_bounds = array<i64: 64, 1>}, {pipeline_mode = #tpu.pipeline_mode<synchronous>, transform_indices = @transform_3, window_bounds = array<i64: 64, 64>}, {pipeline_mode = #tpu.pipeline_mode<synchronous>, transform_indices = @transform_4, window_bounds = array<i64: 64, 1>}, {pipeline_mode = #tpu.pipeline_mode<synchronous>, transform_indices = @transform_5, window_bounds = array<i64: 64, 1>}, {pipeline_mode = #tpu.pipeline_mode<synchronous>, transform_indices = @transform_6, window_bounds = array<i64: 1, 1>}, {transform_indices = @transform_7, window_bounds = array<i64: 1, 128>}]} {
    %c0 = arith.constant 0 : index
    %c0_0 = arith.constant 0 : index
    %0 = vector.load %arg2[%c0, %c0_0] : memref<64x48xf32, #tpu.memory_space<vmem>>, vector<64x48xf32>
    %c0_1 = arith.constant 0 : index
    %c0_2 = arith.constant 0 : index
    %1 = vector.load %arg1[%c0_1, %c0_2] : memref<128x48xf32, #tpu.memory_space<vmem>>, vector<128x48xf32>
    %cst = arith.constant dense<0.000000e+00> : vector<64x128xf32>
    %2 = tpu.matmul %0, %1, %cst {dimension_numbers = #tpu.dot_dimension_numbers<[1], [1], [0], [0], [0, 0, 1, 0], [], []>} : vector<64x48xf32>, vector<128x48xf32>, vector<64x128xf32> -> vector<64x128xf32>
    %c0_3 = arith.constant 0 : index
    %c0_4 = arith.constant 0 : index
    %3 = vector.load %arg3[%c0_3, %c0_4] : memref<64x1xf32, #tpu.memory_space<vmem>>, vector<64x1xf32>
    %4 = vector.broadcast %3 : vector<64x1xf32> to vector<64x128xf32>
    %5 = arith.addf %2, %4 : vector<64x128xf32>
    %cst_5 = arith.constant 0.000000e+00 : f32
    %6 = vector.broadcast %cst_5 : f32 to vector<64x128xf32>
    %7 = arith.maximumf %5, %6 : vector<64x128xf32>
    %c0_6 = arith.constant 0 : index
    %c0_7 = arith.constant 0 : index
    %8 = vector.load %arg4[%c0_6, %c0_7] : memref<64x64xf32, #tpu.memory_space<vmem>>, vector<64x64xf32>
    %cst_8 = arith.constant dense<0.000000e+00> : vector<64x128xf32>
    %9 = tpu.matmul %8, %7, %cst_8 {dimension_numbers = #tpu.dot_dimension_numbers<[1], [0], [0], [1], [0, 0, 1, 1], [], []>} : vector<64x64xf32>, vector<64x128xf32>, vector<64x128xf32> -> vector<64x128xf32>
    %c0_9 = arith.constant 0 : index
    %c0_10 = arith.constant 0 : index
    %10 = vector.load %arg5[%c0_9, %c0_10] : memref<64x1xf32, #tpu.memory_space<vmem>>, vector<64x1xf32>
    %11 = vector.broadcast %10 : vector<64x1xf32> to vector<64x128xf32>
    %12 = arith.addf %9, %11 : vector<64x128xf32>
    %cst_11 = arith.constant 0.000000e+00 : f32
    %13 = vector.broadcast %cst_11 : f32 to vector<64x128xf32>
    %14 = arith.maximumf %12, %13 : vector<64x128xf32>
    %c0_12 = arith.constant 0 : index
    %c0_13 = arith.constant 0 : index
    %15 = vector.load %arg6[%c0_12, %c0_13] : memref<64x1xf32, #tpu.memory_space<vmem>>, vector<64x1xf32>
    %16 = vector.broadcast %15 : vector<64x1xf32> to vector<64x128xf32>
    %17 = arith.mulf %14, %16 : vector<64x128xf32>
    %cst_14 = arith.constant dense<0.000000e+00> : vector<128xf32>
    %18 = vector.multi_reduction <add>, %17, %cst_14 [0] : vector<64x128xf32> to vector<128xf32>
    %19 = vector.shape_cast %18 : vector<128xf32> to vector<1x128xf32>
    %c0_15 = arith.constant 0 : index
    %c0_16 = arith.constant 0 : index
    %20 = vector.load %arg7[%c0_15, %c0_16] : memref<1x1xf32, #tpu.memory_space<vmem>>, vector<1x1xf32>
    %21 = vector.broadcast %20 : vector<1x1xf32> to vector<1x128xf32>
    %22 = arith.addf %19, %21 : vector<1x128xf32>
    %c0_17 = arith.constant 0 : index
    %c0_18 = arith.constant 0 : index
    %23 = vector.load %arg8[%c0_17, %c0_18] : memref<1x128xf32, #tpu.memory_space<vmem>>, vector<1x128xf32>
    tpu.vector_store %arg8[%c0_17, %c0_18], %22 {strides = array<i32>} : memref<1x128xf32, #tpu.memory_space<vmem>>, vector<1x128xf32>,
    return
  }
  func.func @transform_0(%arg0: i32) -> (i32, i32) {
    %c0_i32 = arith.constant 0 : i32
    %c0_i32_0 = arith.constant 0 : i32
    return %arg0, %c0_i32 : i32, i32
  }
  func.func @transform_1(%arg0: i32) -> (i32, i32) {
    %c0_i32 = arith.constant 0 : i32
    %c0_i32_0 = arith.constant 0 : i32
    %c0_i32_1 = arith.constant 0 : i32
    return %c0_i32, %c0_i32_0 : i32, i32
  }
  func.func @transform_2(%arg0: i32) -> (i32, i32) {
    %c0_i32 = arith.constant 0 : i32
    %c0_i32_0 = arith.constant 0 : i32
    %c0_i32_1 = arith.constant 0 : i32
    return %c0_i32, %c0_i32_0 : i32, i32
  }
  func.func @transform_3(%arg0: i32) -> (i32, i32) {
    %c0_i32 = arith.constant 0 : i32
    %c0_i32_0 = arith.constant 0 : i32
    %c0_i32_1 = arith.constant 0 : i32
    return %c0_i32, %c0_i32_0 : i32, i32
  }
  func.func @transform_4(%arg0: i32) -> (i32, i32) {
    %c0_i32 = arith.constant 0 : i32
    %c0_i32_0 = arith.constant 0 : i32
    %c0_i32_1 = arith.constant 0 : i32
    return %c0_i32, %c0_i32_0 : i32, i32
  }
  func.func @transform_5(%arg0: i32) -> (i32, i32) {
    %c0_i32 = arith.constant 0 : i32
    %c0_i32_0 = arith.constant 0 : i32
    %c0_i32_1 = arith.constant 0 : i32
    return %c0_i32, %c0_i32_0 : i32, i32
  }
  func.func @transform_6(%arg0: i32) -> (i32, i32) {
    %c0_i32 = arith.constant 0 : i32
    %c0_i32_0 = arith.constant 0 : i32
    %c0_i32_1 = arith.constant 0 : i32
    return %c0_i32, %c0_i32_0 : i32, i32
  }
  func.func @transform_7(%arg0: i32) -> (i32, i32) {
    %c0_i32 = arith.constant 0 : i32
    %c0_i32_0 = arith.constant 0 : i32
    return %c0_i32, %arg0 : i32, i32
  }
}

</mosaic_0001>

<bundles_post_ra>
// kernel: tpu_custom_call.1
= control target key start
LH: loop header
LB: loop body
LE: loop exit
PB: predicated region body
PF: predicated region fallthrough
CT: control target
= control target key end

     0   :  { %s1091_s0 = inlined_call_operand.vmem [shape: f32[128,48], index: 0, kind: input, shape index: {}]   ;;  %s1092_s1 = inlined_call_operand.vmem [shape: f32[64,48], index: 1, kind: input, shape index: {}]   ;;  %s1093_s2 = inlined_call_operand.vmem [shape: f32[64,1], index: 2, kind: input, shape index: {}]   ;;  %s1094_s3 = inlined_call_operand.vmem [shape: f32[64,64], index: 3, kind: input, shape index: {}]   ;;  %s1095_s4 = inlined_call_operand.vmem [shape: f32[64,1], index: 4, kind: input, shape index: {}]   ;;  %s1096_s5 = inlined_call_operand.vmem [shape: f32[64,1], index: 5, kind: input, shape index: {}]   ;;  %s1097_s6 = inlined_call_operand.<no memory space> [shape: f32[1,1], index: 6, kind: input, shape index: {}]   ;;  %s1098_s7 = inlined_call_operand.hbm [shape: f32[1,128], index: 7, kind: output, shape index: {}]  }
   0x1   :  { %v12_v0 = vstv %s1097_s6 }
   0x2   :  { %13 = vst [vmem:[#allocation2] sm:$0x1] %v12_v0 }
   0x3   :  { %v37_v1 = vld [vmem:[%s1091_s0] sm:$0xff]  ;;  %v38_v2 = vld [vmem:[%s1091_s0 + $0x8] sm:$0xff]  ;;  %vm101_vm0 = vcmask 392192   ;;  %v39_v3 = vld [vmem:[%s1091_s0 + $0x10] sm:$0xff]  ;;  %v812_v7 = vmov 0  }
   0x4   :  { %v720_v4 = vpack.c.bf16 %v38_v2, %v37_v1  ;;  %vm868_vm1 = vmpackc.low %vm101_vm0, %vm101_vm0  ;;  %v40_v6 = vld [vmem:[%s1091_s0 + $0x18] sm:$0xff]  ;;  %786 = vset.pattern.permute.xlu0 %v812_v7  ;;  %787 = vset.pattern.permute.xlu1 %v812_v7  ;;  %v29_v9 = vld [vmem:[%s1092_s1] sm:$0xff] }
   0x5   :  { %v726_v8 = vpack.c.bf16 %v40_v6, %v39_v3  ;;  %v41_v10 = vld [vmem:[%s1091_s0 + $0x20] sm:$0xff]  ;;  %v42_v11 = vld [vmem:[%s1091_s0 + $0x28] sm:$0xff]  ;;  %680 = vmatprep.mubr.msk.f32.mxu0 %vm101_vm0, %v29_v9  ;;  %v55_v14 = vld [vmem:[%s1093_s2 + $0x10] sm:$0xff] }
   0x6   :  { %722 = vmatprep.subr.msk.bf16.mxu0 %vm868_vm1, %v720_v4  ;;  %v53_v12 = vld [vmem:[%s1093_s2] sm:$0xff]  ;;  %v732_v13 = vpack.c.bf16 %v42_v11, %v41_v10  ;;  %v54_v15 = vld [vmem:[%s1093_s2 + $0x8] sm:$0xff]  ;;  %73 = vperm.xlu1 %787, %v55_v14   ;;  %v56_v16 = vld [vmem:[%s1093_s2 + $0x18] sm:$0xff] }
   0x7   :  { %725 = vmatpush3.bf16.xpose.msk.msra.mxu0 %vm868_vm1, %v720_v4  ;;  %63 = vperm.xlu0 %786, %v53_v12   ;;  %v43_v17 = vld [vmem:[%s1091_s0 + $0x30] sm:$0xff]  ;;  %v44_v18 = vld [vmem:[%s1091_s0 + $0x38] sm:$0xff]  ;;  %v57_v19 = vld [vmem:[%s1093_s2 + $0x20] sm:$0xff] }
   0x8   :  { %728 = vmatprep.subr.msk.bf16.mxu0 %vm868_vm1, %v726_v8  ;;  %v58_v20 = vld [vmem:[%s1093_s2 + $0x28] sm:$0xff] }
   0xa   :  { %78 = vperm.xlu1 %787, %v56_v16  }
   0xb   :  { %68 = vperm.xlu0 %786, %v54_v15  }
   0xf   :  { %731 = vmatpush3.bf16.xpose.msk.msra.mxu0 %vm868_vm1, %v726_v8 }
  0x10   :  { %734 = vmatprep.subr.msk.bf16.mxu0 %vm868_vm1, %v732_v13 }
  0x11   :  { %14 = vsyncpa [#allocation4], 0  ;;  %v738_v21 = vpack.c.bf16 %v44_v18, %v43_v17  ;;  %83 = vperm.xlu0 %786, %v57_v19   ;;  %v59_v22 = vld [vmem:[%s1093_s2 + $0x30] sm:$0xff]  ;;  %88 = vperm.xlu1 %787, %v58_v20   ;;  %v60_v23 = vld [vmem:[%s1093_s2 + $0x38] sm:$0xff]  ;;  %vm343_vm2 = vcmask 523264  }
  0x12   :  { %v45_v24 = vld [vmem:[%s1091_s0 + $0x40] sm:$0xff]  ;;  %v46_v25 = vld [vmem:[%s1091_s0 + $0x48] sm:$0xff]  ;;  %v297_v29 = vld [vmem:[%s1095_s4 + $0x10] sm:$0xff] }
  0x13   :  { %v295_v26 = vld [vmem:[%s1095_s4] sm:$0xff]  ;;  %v296_v27 = vld [vmem:[%s1095_s4 + $0x8] sm:$0xff]  ;;  %v744_v28 = vpack.c.bf16 %v46_v25, %v45_v24  ;;  %v298_v30 = vld [vmem:[%s1095_s4 + $0x18] sm:$0xff] }
  0x14   :  { %v47_v31 = vld [vmem:[%s1091_s0 + $0x50] sm:$0xff]  ;;  %v48_v32 = vld [vmem:[%s1091_s0 + $0x58] sm:$0xff]  ;;  %v481_v33 = vld [vmem:[%s1096_s5] sm:$0xff] }
  0x15   :  { %93 = vperm.xlu0 %786, %v59_v22   ;;  %98 = vperm.xlu1 %787, %v60_v23   ;;  %v482_v34 = vld [vmem:[%s1096_s5 + $0x8] sm:$0xff]  ;;  %v750_v35 = vpack.c.bf16 %v48_v32, %v47_v31  ;;  %v299_v36 = vld [vmem:[%s1095_s4 + $0x20] sm:$0xff]  ;;  %v483_v37 = vld [vmem:[%s1096_s5 + $0x10] sm:$0xff] }
  0x16   :  { %v49_v38 = vld [vmem:[%s1091_s0 + $0x60] sm:$0xff]  ;;  %v50_v39 = vld [vmem:[%s1091_s0 + $0x68] sm:$0xff]  ;;  %v484_v41 = vld [vmem:[%s1096_s5 + $0x18] sm:$0xff] }
  0x17   :  { %737 = vmatpush3.bf16.xpose.msk.msra.mxu0 %vm868_vm1, %v732_v13  ;;  %v300_v40 = vld [vmem:[%s1095_s4 + $0x28] sm:$0xff]  ;;  %v756_v42 = vpack.c.bf16 %v50_v39, %v49_v38  ;;  %v301_v43 = vld [vmem:[%s1095_s4 + $0x30] sm:$0xff]  ;;  %v485_v44 = vld [vmem:[%s1096_s5 + $0x20] sm:$0xff] }
  0x18   :  { %740 = vmatprep.subr.msk.bf16.mxu0 %vm868_vm1, %v738_v21  ;;  %v51_v45 = vld [vmem:[%s1091_s0 + $0x70] sm:$0xff]  ;;  %v52_v46 = vld [vmem:[%s1091_s0 + $0x78] sm:$0xff]  ;;  %v486_v48 = vld [vmem:[%s1096_s5 + $0x28] sm:$0xff] }
  0x19   :  { %305 = vperm.xlu0 %786, %v295_v26   ;;  %310 = vperm.xlu1 %787, %v296_v27   ;;  %v302_v47 = vld [vmem:[%s1095_s4 + $0x38] sm:$0xff]  ;;  %v762_v49 = vpack.c.bf16 %v52_v46, %v51_v45  ;;  %v487_v50 = vld [vmem:[%s1096_s5 + $0x30] sm:$0xff]  ;;  %v550_v52 = vld [vmem:[#allocation2] sm:$0x1] }
  0x1a   :  { %v488_v51 = vld [vmem:[%s1096_s5 + $0x38] sm:$0xff]  ;;  %v30_v53 = vld [vmem:[%s1092_s1 + $0x8] sm:$0xff]  ;;  %v31_v54 = vld [vmem:[%s1092_s1 + $0x10] sm:$0xff] }
  0x1b   :  { %v32_v55 = vld [vmem:[%s1092_s1 + $0x18] sm:$0xff]  ;;  %v33_v56 = vld [vmem:[%s1092_s1 + $0x20] sm:$0xff]  ;;  %v34_v57 = vld [vmem:[%s1092_s1 + $0x28] sm:$0xff] }
  0x1c   :  { %v35_v58 = vld [vmem:[%s1092_s1 + $0x30] sm:$0xff]  ;;  %v36_v59 = vld [vmem:[%s1092_s1 + $0x38] sm:$0xff]  ;;  %v287_v60 = vld [vmem:[%s1094_s3] sm:$0xff] }
  0x1d   :  { %315 = vperm.xlu0 %786, %v297_v29   ;;  %320 = vperm.xlu1 %787, %v298_v30   ;;  %v293_v38 = vld [vmem:[%s1094_s3 + $0x30] sm:$0xff]  ;;  %v294_v39 = vld [vmem:[%s1094_s3 + $0x38] sm:$0xff] }
  0x1e   :  { %708 = vmatprep.mubr.msk.f32.mxu1 %vm343_vm2, %v287_v60 }
  0x1f   :  { %743 = vmatpush3.bf16.xpose.msk.msra.mxu0 %vm868_vm1, %v738_v21 }
  0x20   :  { %746 = vmatprep.subr.msk.bf16.mxu0 %vm868_vm1, %v744_v28 }
  0x21   :  { %491 = vperm.xlu0 %786, %v481_v33   ;;  %496 = vperm.xlu1 %787, %v482_v34   ;;  %v288_v33 = vld [vmem:[%s1094_s3 + $0x8] sm:$0xff]  ;;  %v289_v34 = vld [vmem:[%s1094_s3 + $0x10] sm:$0xff] }
  0x25   :  { %325 = vperm.xlu0 %786, %v299_v36   ;;  %501 = vperm.xlu1 %787, %v483_v37   ;;  %v291_v36 = vld [vmem:[%s1094_s3 + $0x20] sm:$0xff]  ;;  %v292_v37 = vld [vmem:[%s1094_s3 + $0x28] sm:$0xff] }
  0x27   :  { %749 = vmatpush3.bf16.xpose.msk.msra.mxu0 %vm868_vm1, %v744_v28 }
  0x28   :  { %752 = vmatprep.subr.msk.bf16.mxu0 %vm868_vm1, %v750_v35 }
  0x29   :  { %330 = vperm.xlu0 %786, %v300_v40   ;;  %506 = vperm.xlu1 %787, %v484_v41  }
  0x2d   :  { %335 = vperm.xlu0 %786, %v301_v43   ;;  %511 = vperm.xlu1 %787, %v485_v44  }
  0x2f   :  { %755 = vmatpush3.bf16.xpose.msk.msra.mxu0 %vm868_vm1, %v750_v35  ;;  %v290_v35 = vld [vmem:[%s1094_s3 + $0x18] sm:$0xff]  ;;  %s813_s3 = smov [#allocation3]  }
  0x30   :  { %758 = vmatprep.subr.msk.bf16.mxu0 %vm868_vm1, %v756_v42  ;;  %s568_s4 = sshll.u32 %s813_s3, 4  ;;  %s569_s4 = int_to_ptr.vmem [resolvable:$true] %s568_s4 }
  0x31   :  { %340 = vperm.xlu0 %786, %v302_v47   ;;  %516 = vperm.xlu1 %787, %v486_v48   ;;  %s788_s10 = scalar_lea.vmem %s569_s4, 16  ;;  %s792_s11 = scalar_lea.vmem %s569_s4, 32 }
  0x32   :  { %p789_p0 = scmp.ne.s32.totalorder %s569_s4, %s788_s10  ;;  %p793_p1 = scmp.lt.s32.totalorder %s569_s4, %s569_s4 }
  0x33   :  { %p794_p2 = scmp.lt.s32.totalorder %s792_s11, %s788_s10 }
  0x35   :  { %521 = vperm.xlu0 %786, %v487_v50   ;;  %526 = vperm.xlu1 %787, %v488_v51   ;;  %p795_p3 = por %p794_p2, %p793_p1 }
  0x37   :  { %761 = vmatpush3.bf16.xpose.msk.msra.mxu0 %vm868_vm1, %v756_v42  ;;  %p796_p4 = pnand %p795_p3, %p789_p0 }
  0x38   :  { %764 = vmatprep.subr.msk.bf16.mxu0 %vm868_vm1, %v762_v49 }
  0x39   :  { %553 = vperm.xlu0 %786, %v550_v52  }
  0x3f   :  { %767 = vmatpush3.bf16.xpose.msk.msra.mxu0 %vm868_vm1, %v762_v49 }
  0x46   :  { %681 = vmatmul.mubr.msk.f32.vlgmr.msra.gmra.mrb[0].mxu0 %vm101_vm0, %v30_v53 }
  0x47   :  { %683 = vmatprep.mubr.msk.f32.mxu0 %vm101_vm0, %v31_v54 }
  0x4a   :  { %684 = vmatmul.mubr.msk.f32.gmra.mrb[2].mxu0 %vm101_vm0, %v32_v55 }
  0x4b   :  { %686 = vmatprep.mubr.msk.f32.mxu0 %vm101_vm0, %v33_v56 }
  0x4e   :  { %687 = vmatmul.mubr.msk.f32.gmra.mrb[4].mxu0 %vm101_vm0, %v34_v57 }
  0x4f   :  { %689 = vmatprep.mubr.msk.f32.mxu0 %vm101_vm0, %v35_v58 }
  0x52   :  { %690 = vmatmul.mubr.msk.f32.gmra.mrb[6].mxu0 %vm101_vm0, %v36_v59 }
  0x85   :  { %v74_v62 = vpop.permute.xlu1 %73 }
  0x86   :  { %v64_v61 = vpop.permute.xlu0 %63 }
  0x89   :  { %v79_v0 = vpop.permute.xlu1 %78 }
  0x8a   :  { %v69_v63 = vpop.permute.xlu0 %68 }
  0x90   :  { %v89_v10 = vpop.permute.xlu1 %88  ;;  %v84_v13 = vpop.permute.xlu0 %83 }
  0x94   :  { %v99_v22 = vpop.permute.xlu1 %98  ;;  %v94_v25 = vpop.permute.xlu0 %93 }
  0x98   :  { %v306_v40 = vpop.permute.xlu0 %305  ;;  %v311_v41 = vpop.permute.xlu1 %310 }
  0x9c   :  { %v316_v42 = vpop.permute.xlu0 %315  ;;  %v321_v43 = vpop.permute.xlu1 %320 }
  0xa0   :  { %v492_v44 = vpop.permute.xlu0 %491  ;;  %v497_v45 = vpop.permute.xlu1 %496 }
  0xa4   :  { %v326_v46 = vpop.permute.xlu0 %325  ;;  %v502_v47 = vpop.permute.xlu1 %501 }
  0xa8   :  { %v331_v48 = vpop.permute.xlu0 %330  ;;  %v507_v50 = vpop.permute.xlu1 %506 }
  0xac   :  { %v336_v57 = vpop.permute.xlu0 %335 }
 0x119   :  { %v682_v1 = vpop.f32.mrb[0].mxu0 }
 0x11a   :  { %v246_v2 = vadd.f32 %v682_v1, %v69_v63  ;;  %v240_v3 = vpop.f32.mrb[1].mxu0  ;;  %v512_v63 = vpop.permute.xlu1 %511 }
 0x11b   :  { %v241_v4 = vadd.f32 %v240_v3, %v64_v61 }
 0x11c   :  { %v280_v5 = vmax.f32 %v246_v2, 0.0 }
 0x11d   :  { %v279_v6 = vmax.f32 %v241_v4, 0.0  ;;  %v685_v7 = vpop.f32.mrb[2].mxu0 }
 0x11e   :  { %v256_v8 = vadd.f32 %v685_v7, %v79_v0  ;;  %v250_v9 = vpop.f32.mrb[3].mxu0 }
 0x11f   :  { %v251_v11 = vadd.f32 %v250_v9, %v74_v62  ;;  %v768_v12 = vpack.c.bf16 %v280_v5, %v279_v6 }
 0x120   :  { %v282_v14 = vmax.f32 %v256_v8, 0.0  ;;  %v341_v8 = vpop.permute.xlu0 %340 }
 0x121   :  { %v281_v15 = vmax.f32 %v251_v11, 0.0  ;;  %v688_v16 = vpop.f32.mrb[4].mxu0  ;;  %769 = vmatprep.subr.bf16.mxu1 %v768_v12 }
 0x122   :  { %v266_v17 = vadd.f32 %v688_v16, %v89_v10  ;;  %v260_v18 = vpop.f32.mrb[5].mxu0  ;;  %771 = vmatpush3.bf16.msra.mxu1 %v768_v12 }
 0x123   :  { %v772_v19 = vpack.c.bf16 %v282_v14, %v281_v15  ;;  %v261_v20 = vadd.f32 %v260_v18, %v84_v13  ;;  %v517_v14 = vpop.permute.xlu1 %516 }
 0x124   :  { %v284_v21 = vmax.f32 %v266_v17, 0.0 }
 0x125   :  { %v283_v23 = vmax.f32 %v261_v20, 0.0  ;;  %v691_v24 = vpop.f32.mrb[6].mxu0  ;;  %773 = vmatprep.subr.bf16.mxu1 %v772_v19 }
 0x126   :  { %v276_v26 = vadd.f32 %v691_v24, %v99_v22  ;;  %v270_v27 = vpop.f32.mrb[7].mxu0  ;;  %775 = vmatpush3.bf16.msra.mxu1 %v772_v19  ;;  %v522_v24 = vpop.permute.xlu0 %521 }
 0x127   :  { %v776_v28 = vpack.c.bf16 %v284_v21, %v283_v23  ;;  %v271_v29 = vadd.f32 %v270_v27, %v94_v25  ;;  %v527_v27 = vpop.permute.xlu1 %526 }
 0x128   :  { %v286_v30 = vmax.f32 %v276_v26, 0.0 }
 0x129   :  { %v285_v31 = vmax.f32 %v271_v29, 0.0  ;;  %777 = vmatprep.subr.bf16.mxu1 %v776_v28 }
 0x12a   :  { %779 = vmatpush3.bf16.msra.mxu1 %v776_v28 }
 0x12b   :  { %v780_v32 = vpack.c.bf16 %v286_v30, %v285_v31  ;;  %v556_v30 = vlaneseq }
 0x12d   :  { %781 = vmatprep.subr.bf16.mxu1 %v780_v32 }
 0x12e   :  { %783 = vmatpush3.bf16.msra.mxu1 %v780_v32 }
 0x131   :  { %709 = vmatmul.mubr.msk.f32.vlgmr.msra.gmra.mrb[0].mxu1 %vm343_vm2, %v288_v33  ;;  %v557_v33 = vshrl.u32 %v556_v30, 7 }
 0x132   :  { %711 = vmatprep.mubr.msk.f32.mxu1 %vm343_vm2, %v289_v34 }
 0x135   :  { %712 = vmatmul.mubr.msk.f32.gmra.mrb[2].mxu1 %vm343_vm2, %v290_v35 }
 0x136   :  { %714 = vmatprep.mubr.msk.f32.mxu1 %vm343_vm2, %v291_v36  ;;  %v558_v36 = vsub.s32 0, %v557_v33 }
 0x139   :  { %715 = vmatmul.mubr.msk.f32.gmra.mrb[4].mxu1 %vm343_vm2, %v292_v37 }
 0x13a   :  { %717 = vmatprep.mubr.msk.f32.mxu1 %vm343_vm2, %v293_v38  ;;  %v554_v38 = vpop.permute.xlu0 %553 }
 0x13d   :  { %718 = vmatmul.mubr.msk.f32.gmra.mrb[6].mxu1 %vm343_vm2, %v294_v39 }
 0x204   :  { %v710_v49 = vpop.f32.mrb[0].mxu1 }
 0x205   :  { %v440_v51 = vadd.f32 %v710_v49, %v311_v41  ;;  %v434_v52 = vpop.f32.mrb[1].mxu1 }
 0x206   :  { %v435_v53 = vadd.f32 %v434_v52, %v306_v40  ;;  %v559_v40 = vrot.slane %v554_v38, %v558_v36 }
 0x207   :  { %v474_v54 = vmax.f32 %v440_v51, 0.0 }
 0x208   :  { %v473_v55 = vmax.f32 %v435_v53, 0.0  ;;  %v713_v56 = vpop.f32.mrb[2].mxu1 }
 0x209   :  { %v530_v58 = vmul.f32 %v497_v45, %v474_v54  ;;  %v450_v59 = vadd.f32 %v713_v56, %v321_v43  ;;  %v444_v60 = vpop.f32.mrb[3].mxu1 }
 0x20a   :  { %v529_v61 = vmul.f32 %v492_v44, %v473_v55  ;;  %v445_v62 = vadd.f32 %v444_v60, %v316_v42 }
 0x20b   :  { %v476_v1 = vmax.f32 %v450_v59, 0.0 }
 0x20c   :  { %v537_v0 = vadd.f32 %v530_v58, %v529_v61  ;;  %v475_v2 = vmax.f32 %v445_v62, 0.0  ;;  %v716_v3 = vpop.f32.mrb[4].mxu1 }
 0x20d   :  { %v460_v4 = vadd.f32 %v716_v3, %v331_v48  ;;  %v454_v5 = vpop.f32.mrb[5].mxu1  ;;  %v532_v9 = vmul.f32 %v507_v50, %v476_v1 }
 0x20e   :  { %v531_v6 = vmul.f32 %v502_v47, %v475_v2  ;;  %v455_v7 = vadd.f32 %v454_v5, %v326_v46 }
 0x20f   :  { %v478_v11 = vmax.f32 %v460_v4, 0.0 }
 0x210   :  { %v538_v10 = vadd.f32 %v537_v0, %v531_v6  ;;  %v477_v12 = vmax.f32 %v455_v7, 0.0  ;;  %v719_v13 = vpop.f32.mrb[6].mxu1 }
 0x211   :  { %v470_v15 = vadd.f32 %v719_v13, %v341_v8  ;;  %v464_v16 = vpop.f32.mrb[7].mxu1  ;;  %v534_v20 = vmul.f32 %v517_v14, %v478_v11 }
 0x212   :  { %v533_v17 = vmul.f32 %v512_v63, %v477_v12  ;;  %v539_v18 = vadd.f32 %v538_v10, %v532_v9  ;;  %v465_v19 = vadd.f32 %v464_v16, %v336_v57 }
 0x213   :  { %v480_v22 = vmax.f32 %v470_v15, 0.0 }
 0x214   :  { %v540_v21 = vadd.f32 %v539_v18, %v533_v17  ;;  %v479_v23 = vmax.f32 %v465_v19, 0.0 }
 0x215   :  { %v536_v28 = vmul.f32 %v527_v27, %v480_v22 }
 0x216   :  { %v535_v25 = vmul.f32 %v522_v24, %v479_v23  ;;  %v541_v26 = vadd.f32 %v540_v21, %v534_v20 }
 0x218   :  { %v542_v29 = vadd.f32 %v541_v26, %v535_v25 }
 0x21a   :  { %v543_v31 = vadd.f32 %v542_v29, %v536_v28 }
 0x21c   :  { %v544_v32 = vrot.slane %v543_v31, 4 }
 0x21e   :  { %v545_v34 = vadd.f32 %v544_v32, %v543_v31 }
 0x220   :  { %v546_v35 = vrot.slane %v545_v34, 2 }
 0x222   :  { %v547_v37 = vadd.f32 %v546_v35, %v545_v34 }
 0x224   :  { %v548_v39 = vrot.slane %v547_v37, 1 }
 0x226   :  { %v549_v41 = vadd.f32 %v548_v39, %v547_v37 }
 0x228   :  { %v560_v42 = vadd.f32 %v559_v40, %v549_v41 }
 0x22a   :  { %561 = vst [vmem:[#allocation3] sm:$0x1] %v560_v42 }
 0x22b   :  { %799 = shalt.err (!%p796_p4)
}
 0x22c   :  { %s800_s13 = scalar_lea.hbm %s1098_s7, 16 }
 0x22d   :  { %p801_p5 = scmp.ne.s32.totalorder %s1098_s7, %s800_s13  ;;  %p804_p6 = scmp.lt.u32.totalorder %s800_s13, %s1098_s7 }
 0x22f   :  { %p806_p7 = pnand %p804_p6, %p801_p5 }
 0x231   :  { %809 = shalt.err (!%p806_p7)
}
 0x232   :  { %571 = dma.vmem_to_hbm [thread:$0]  %s569_s4, 16, %s1098_s7, [#allocation4]  }
 0x233   :  { %810 = dma.done.wait [#allocation4], 16  }
 0x234   :  { %811 = vsyncadd [#allocation4], 4294967280 }
 0x235   :  { %575 = vsyncpa [#allocation4], 1 }

</bundles_post_ra>
